<compile_context>
chip_gen: v6e
topology: v6e:2x2x1
jax: 0.10.0
libtpu: 0.0.40
codegen_flags: <defaults>
</compile_context>

<pallas_src>
import jax
import jax.numpy as jnp
from jax.experimental import pallas as pl
from jax.experimental.pallas import tpu as pltpu

_LANES = 128
# ~2 MiB blocks: 2x(in + out) double buffers = 8 MiB, fits every generation's
# default scoped VMEM while reaching ~85%+ of HBM roofline.
_TARGET_BLOCK_BYTES = 2 * 1024 * 1024


def _copy_kernel(x_ref, o_ref):
    # The entire forward pass of NoSEBlock: o = x.  Pure pass-through on the
    # full tile; no per-element compute (the binding slots are DMA/vst).
    o_ref[...] = x_ref[...]


def _sublane_pack(dtype):
    # Rows per packed sublane tile: 8 for 32-bit, 16 for bf16/f16, 32 for int8/fp8.
    return max(8, 32 // jnp.dtype(dtype).itemsize)


def _identity_copy_2d(x2d):
    """Tiled lane-dense identity copy of a 2-D slab, in place via io aliasing."""
    rows, cols = x2d.shape
    itemsize = jnp.dtype(x2d.dtype).itemsize
    pack = _sublane_pack(x2d.dtype)

    # As many packed-sublane row groups as fit the target block size.
    rows_per_block = max(pack, _TARGET_BLOCK_BYTES // max(1, cols * itemsize))
    rows_per_block = max(pack, (rows_per_block // pack) * pack)
    if rows_per_block >= rows:
        rows_per_block = rows  # single full-extent block (always layout-legal)

    grid = (pl.cdiv(rows, rows_per_block),)
    block = (rows_per_block, cols)

    return pl.pallas_call(
        _copy_kernel,
        out_shape=jax.ShapeDtypeStruct((rows, cols), x2d.dtype),
        grid_spec=pltpu.PrefetchScalarGridSpec(
            num_scalar_prefetch=0,
            grid=grid,
            in_specs=[pl.BlockSpec(block, lambda i: (i, 0))],
            out_specs=pl.BlockSpec(block, lambda i: (i, 0)),
        ),
        # Reuse the input HBM buffer for the output; with a donated input there
        # is no extra allocation and the copy runs in place.
        input_output_aliases={0: 0},
        compiler_params=pltpu.CompilerParams(
            dimension_semantics=("parallel",),  # shards blocks across v7x's 2 TCs
        ),
    )(x2d)


def no_se_block_forward(x, input_dim=None, reduction=None):
    """Pallas TPU implementation of NoSEBlock.forward (identity).

    Args:
      x: input array (e.g. NCHW activations).
      input_dim, reduction: unused, kept for signature parity with the module.

    Returns:
      Array identical to x (same shape, dtype, values).

    Note: in a real model this op should simply be elided (return x).  When the
    kernel is used, call it under jit with the input donated so the
    input_output_aliases can be honored without a defensive copy.
    """
    if x.ndim == 0 or x.size == 0:
        return x

    total = x.size
    if total % _LANES == 0:
        # Lane-dense flatten: last dim a multiple of 128 -> unmasked full-vreg
        # tiles and fully contiguous DMAs for any N, C, H, W.
        x2d = x.reshape(total // _LANES, _LANES)
    else:
        # Element count not a multiple of 128: fall back to full-lane-extent
        # blocks over the trailing dim (correct; lane stores may be masked).
        x2d = x.reshape(-1, x.shape[-1])

    y2d = _identity_copy_2d(x2d)
    return y2d.reshape(x.shape)


if __name__ == "__main__":
    key = jax.random.PRNGKey(0)
    shape = (2, 4, 16, 16)  # batch=2, channels=4, spatial 16x16 (NCHW)
    dtype = jnp.float32

    x = jax.random.normal(key, shape, dtype=dtype)
    # Independent buffer with identical values, kept for verification (x itself
    # is donated to the kernel below and becomes invalid afterwards).
    expected = jax.random.normal(key, shape, dtype=dtype)

    # Donate the input so the pallas_call's input_output_aliases lets XLA run
    # the identity in place instead of paying for a second HBM buffer.
    fwd = jax.jit(no_se_block_forward, donate_argnums=(0,))
    y = jax.block_until_ready(fwd(x))

    assert y.shape == expected.shape and y.dtype == expected.dtype
    assert bool(jnp.all(y == expected))
    print("KERNEL_OK")
</pallas_src>

<mosaic_0001>
module attributes {stable_mosaic.version = 11 : i64} {
  func.func @_copy_kernel(%arg0: i32, %arg1: memref<16x128xf32, #tpu.memory_space<vmem>>, %arg2: memref<16x128xf32, #tpu.memory_space<vmem>>) attributes {dimension_semantics = [#tpu.dimension_semantics<parallel>], iteration_bounds = array<i64: 1>, scalar_prefetch = 0 : i64, scratch_operands = 0 : i64, tpu.core_type = #tpu.core_type<tc>, window_params = [{transform_indices = @transform_0, window_bounds = array<i64: 16, 128>}, {transform_indices = @transform_1, window_bounds = array<i64: 16, 128>}]} {
    %c0 = arith.constant 0 : index
    %c0_0 = arith.constant 0 : index
    %0 = vector.load %arg1[%c0, %c0_0] : memref<16x128xf32, #tpu.memory_space<vmem>>, vector<16x128xf32>
    %c0_1 = arith.constant 0 : index
    %c0_2 = arith.constant 0 : index
    %1 = vector.load %arg2[%c0_1, %c0_2] : memref<16x128xf32, #tpu.memory_space<vmem>>, vector<16x128xf32>
    tpu.vector_store %arg2[%c0_1, %c0_2], %0 {strides = array<i32>} : memref<16x128xf32, #tpu.memory_space<vmem>>, vector<16x128xf32>,
    return
  }
  func.func @transform_0(%arg0: i32) -> (i32, i32) {
    %c0_i32 = arith.constant 0 : i32
    %c0_i32_0 = arith.constant 0 : i32
    return %arg0, %c0_i32 : i32, i32
  }
  func.func @transform_1(%arg0: i32) -> (i32, i32) {
    %c0_i32 = arith.constant 0 : i32
    %c0_i32_0 = arith.constant 0 : i32
    return %arg0, %c0_i32 : i32, i32
  }
}

</mosaic_0001>

<bundles_post_ra>
// kernel: no_se_block_forward.1
= control target key start
LH: loop header
LB: loop body
LE: loop exit
PB: predicated region body
PF: predicated region fallthrough
CT: control target
= control target key end

     0   :  { %s38_s0 = inlined_call_operand.vmem [shape: f32[16,128], index: 0, kind: input, shape index: {}, may-alias: {0,1}]   ;;  %s39_s1 = inlined_call_operand.vmem [shape: f32[16,128], index: 1, kind: output, shape index: {}, may-alias: {0,1}]  }
   0x1   :  { %v8_v0 = vld [vmem:[%s38_s0] sm:$0xff]  ;;  %v9_v1 = vld [vmem:[%s38_s0 + $0x8] sm:$0xff] }
   0x2   :  { %10 = vst [vmem:[%s39_s1] sm:$0xff] %v8_v0  ;;  %11 = vst [vmem:[%s39_s1 + $0x8] sm:$0xff] %v9_v1 }

</bundles_post_ra>
